<compile_context>
chip_gen: v6e
topology: v6e:2x2x1
jax: 0.10.0
libtpu: 0.0.40
codegen_flags: <defaults>
</compile_context>

<pallas_src>
import functools

import jax
import jax.numpy as jnp
from jax.experimental import pallas as pl
from jax.experimental.pallas import tpu as pltpu


def _ce_kernel(feat_ref, lbl_ref, out_ref, *, n_rows, tile_n):
    """One batch tile of cross entropy -> one per-tile partial sum.

    feat_ref: (C, TILE_N) logits in native dtype, VMEM (classes on sublanes,
              batch rows on lanes -> lane-dense for small C)
    lbl_ref:  (1, TILE_N) int32 class indices, VMEM
    out_ref:  (1, 8, 128) float32 VMEM block holding this tile's partial sum
              broadcast across all elements (full, unmasked vst).
    """
    i = pl.program_id(0)

    x = feat_ref[...].astype(jnp.float32)                        # upcast once per tile
    lbl = lbl_ref[...]                                           # (1, TILE_N) int32

    # Numerically stable per-column (per-row-of-batch) logsumexp over classes.
    m = jnp.max(x, axis=0, keepdims=True)                        # (1, TILE_N)
    lse = jnp.log(jnp.sum(jnp.exp(x - m), axis=0, keepdims=True)) + m

    # Target-logit gather via class-iota == label one-hot mask (sublane reduce,
    # only ceil(C/8) vregs tall).
    cls = jax.lax.broadcasted_iota(jnp.int32, x.shape, 0)        # (C, TILE_N)
    sel = jnp.sum(jnp.where(cls == lbl, x, 0.0), axis=0, keepdims=True)

    # Mask batch rows past the true batch size (padded last-tile reads are
    # unspecified; `where` is a select so NaNs in masked columns cannot leak).
    col = i * tile_n + jax.lax.broadcasted_iota(jnp.int32, (1, tile_n), 1)
    nll = jnp.where(col < n_rows, lse - sel, 0.0)                # (1, TILE_N)

    # Per-tile partial sum; the mean over N is finished in the wrapper so the
    # grid has no cross-step carry and can be sharded across TensorCores.
    partial = jnp.sum(nll)
    out_ref[...] = jnp.broadcast_to(partial, (1, 8, 128)).astype(jnp.float32)


def _choose_tile_rows(n, c, itemsize, tile_rows):
    if tile_rows is None:
        budget_bytes = 2 * 1024 * 1024        # per (double-buffered) logits buffer
        tile_rows = budget_bytes // max(1, c * itemsize)
        tile_rows = min(tile_rows, 32768)     # perf-review range: 8k-32k rows
    if tile_rows >= n:
        return n                              # single tile; block == full dim is legal
    return max(128, (tile_rows // 128) * 128)  # batch rows live on lanes -> 128-aligned


def cross_entropy_loss(features, labels, *, tile_rows=None):
    """features: (N, C) float logits (any float dtype); labels: (N,) int class ids."""
    n, c = features.shape
    itemsize = jnp.dtype(features.dtype).itemsize

    # Lane-dense layout: classes on sublanes, batch on lanes.
    feat_t = jnp.transpose(features)                   # (C, N), native dtype
    lbl_2d = labels.astype(jnp.int32).reshape(1, n)    # (1, N)

    tile_n = _choose_tile_rows(n, c, itemsize, tile_rows)
    num_tiles = pl.cdiv(n, tile_n)
    # TODO(synk): for vocab-sized C also tile the class axis with an online
    # logsumexp; C=10 here fits comfortably in the sublane direction.

    kernel = functools.partial(_ce_kernel, n_rows=n, tile_n=tile_n)

    grid_spec = pltpu.PrefetchScalarGridSpec(
        num_scalar_prefetch=0,
        grid=(num_tiles,),
        in_specs=[
            pl.BlockSpec((c, tile_n), lambda i: (0, i)),   # logits column tile
            pl.BlockSpec((1, tile_n), lambda i: (0, i)),   # labels column tile
        ],
        out_specs=pl.BlockSpec((1, 8, 128), lambda i: (i, 0, 0)),
    )

    # VMEM budget: double-buffered inputs/outputs + headroom for the f32
    # intermediates of the elementwise/log-sum-exp chain.
    f32_tile = c * tile_n * 4
    in_bufs = 2 * (c * tile_n * itemsize + tile_n * 4)
    out_bufs = 2 * (8 * 128 * 4)
    vmem_limit = min(64 * 1024 * 1024,
                     max(8 * 1024 * 1024,
                         in_bufs + out_bufs + 10 * f32_tile + (2 << 20)))

    cost = pl.CostEstimate(
        flops=int(5 * n * c),
        transcendentals=int(n * c),
        bytes_accessed=int(n * c * itemsize + n * 4 + num_tiles * 8 * 128 * 4),
    )

    partials = pl.pallas_call(
        kernel,
        out_shape=jax.ShapeDtypeStruct((num_tiles, 8, 128), jnp.float32),
        grid_spec=grid_spec,
        compiler_params=pltpu.CompilerParams(
            dimension_semantics=("parallel",),   # no cross-step carry -> both v7x TCs
            vmem_limit_bytes=int(vmem_limit),
        ),
        cost_estimate=cost,
    )(feat_t, lbl_2d)

    # reduction='mean': finish the tiny cross-tile sum outside the kernel.
    return jnp.sum(partials[:, 0, 0]) / jnp.float32(n)


def _reference_cross_entropy(features, labels):
    x = features.astype(jnp.float32)
    lse = jax.scipy.special.logsumexp(x, axis=-1)
    sel = jnp.take_along_axis(x, labels.astype(jnp.int32)[:, None], axis=-1)[:, 0]
    return jnp.mean(lse - sel)


if __name__ == "__main__":
    key = jax.random.PRNGKey(0)
    k1, k2, k3, k4 = jax.random.split(key, 4)

    # 1) CIFAR-10-like shapes implied by the module: batch=8, num_classes=10.
    features = jax.random.normal(k1, (8, 10), dtype=jnp.float32)
    labels = jax.random.randint(k2, (8,), 0, 10, dtype=jnp.int32)
    loss = jax.block_until_ready(cross_entropy_loss(features, labels))
    ref = _reference_cross_entropy(features, labels)
    assert jnp.allclose(loss, ref, rtol=1e-5, atol=1e-5), (loss, ref)

    # 2) Multi-tile + ragged batch (forced small tile -> 5 tiles, last partial):
    #    exercises the parallel per-tile partial sums and the column masking.
    features2 = jax.random.normal(k3, (1100, 10), dtype=jnp.float32)
    labels2 = jax.random.randint(k4, (1100,), 0, 10, dtype=jnp.int32)
    loss2 = jax.block_until_ready(cross_entropy_loss(features2, labels2, tile_rows=256))
    ref2 = _reference_cross_entropy(features2, labels2)
    assert jnp.allclose(loss2, ref2, rtol=1e-5, atol=1e-5), (loss2, ref2)

    # 3) Native bf16 logits over the wire (in-kernel f32 upcast), default tile.
    features3 = features2.astype(jnp.bfloat16)
    loss3 = jax.block_until_ready(cross_entropy_loss(features3, labels2))
    ref3 = _reference_cross_entropy(features3, labels2)
    assert jnp.allclose(loss3, ref3, rtol=1e-5, atol=1e-5), (loss3, ref3)

    print("KERNEL_OK")
</pallas_src>

<mosaic_0001>
module attributes {stable_mosaic.version = 11 : i64} {
  func.func @_ce_kernel(%arg0: i32, %arg1: memref<10x8xf32, #tpu.memory_space<vmem>>, %arg2: memref<1x8xi32, #tpu.memory_space<vmem>>, %arg3: memref<1x8x128xf32, #tpu.memory_space<vmem>>) attributes {dimension_semantics = [#tpu.dimension_semantics<parallel>], iteration_bounds = array<i64: 1>, scalar_prefetch = 0 : i64, scratch_operands = 0 : i64, tpu.core_type = #tpu.core_type<tc>, window_params = [{transform_indices = @transform_0, window_bounds = array<i64: 10, 8>}, {transform_indices = @transform_1, window_bounds = array<i64: 1, 8>}, {transform_indices = @transform_2, window_bounds = array<i64: 1, 8, 128>}]} {
    %c0 = arith.constant 0 : index
    %c0_0 = arith.constant 0 : index
    %0 = vector.load %arg1[%c0, %c0_0] : memref<10x8xf32, #tpu.memory_space<vmem>>, vector<10x8xf32>
    %c0_1 = arith.constant 0 : index
    %c0_2 = arith.constant 0 : index
    %1 = vector.load %arg2[%c0_1, %c0_2] : memref<1x8xi32, #tpu.memory_space<vmem>>, vector<1x8xi32>
    %cst = arith.constant dense<0xFF800000> : vector<8xf32>
    %2 = vector.multi_reduction <maximumf>, %0, %cst [0] : vector<10x8xf32> to vector<8xf32>
    %3 = vector.shape_cast %2 : vector<8xf32> to vector<1x8xf32>
    %4 = vector.broadcast %3 : vector<1x8xf32> to vector<10x8xf32>
    %5 = arith.subf %0, %4 : vector<10x8xf32>
    %6 = math.exp %5 : vector<10x8xf32>
    %cst_3 = arith.constant dense<0.000000e+00> : vector<8xf32>
    %7 = vector.multi_reduction <add>, %6, %cst_3 [0] : vector<10x8xf32> to vector<8xf32>
    %8 = vector.shape_cast %7 : vector<8xf32> to vector<1x8xf32>
    %9 = math.log %8 : vector<1x8xf32>
    %10 = arith.addf %9, %3 : vector<1x8xf32>
    %11 = tpu.iota {dimensions = array<i32: 0>} : vector<10x8xi32>
    %12 = vector.broadcast %1 : vector<1x8xi32> to vector<10x8xi32>
    %13 = arith.cmpi eq, %11, %12 : vector<10x8xi32>
    %cst_4 = arith.constant 0.000000e+00 : f32
    %14 = vector.broadcast %cst_4 : f32 to vector<10x8xf32>
    %15 = arith.select %13, %0, %14 : vector<10x8xi1>, vector<10x8xf32>
    %cst_5 = arith.constant dense<0.000000e+00> : vector<8xf32>
    %16 = vector.multi_reduction <add>, %15, %cst_5 [0] : vector<10x8xf32> to vector<8xf32>
    %17 = vector.shape_cast %16 : vector<8xf32> to vector<1x8xf32>
    %c8_i32 = arith.constant 8 : i32
    %18 = arith.muli %arg0, %c8_i32 : i32
    %19 = tpu.iota {dimensions = array<i32: 1>} : vector<1x8xi32>
    %20 = vector.broadcast %18 : i32 to vector<1x8xi32>
    %21 = arith.addi %20, %19 : vector<1x8xi32>
    %c8_i32_6 = arith.constant 8 : i32
    %22 = vector.broadcast %c8_i32_6 : i32 to vector<1x8xi32>
    %23 = arith.cmpi slt, %21, %22 : vector<1x8xi32>
    %24 = arith.subf %10, %17 : vector<1x8xf32>
    %cst_7 = arith.constant 0.000000e+00 : f32
    %25 = vector.broadcast %cst_7 : f32 to vector<1x8xf32>
    %26 = arith.select %23, %24, %25 : vector<1x8xi1>, vector<1x8xf32>
    %27 = vector.shape_cast %26 : vector<1x8xf32> to vector<1x1x8xf32>
    %cst_8 = arith.constant dense<0.000000e+00> : vector<1xf32>
    %28 = vector.multi_reduction <add>, %27, %cst_8 [1, 2] : vector<1x1x8xf32> to vector<1xf32>
    %29 = vector.shape_cast %28 : vector<1xf32> to vector<1x1x1xf32>
    %30 = vector.extract %29[0, 0, 0] : f32 from vector<1x1x1xf32>
    %31 = vector.broadcast %30 : f32 to vector<1x8x128xf32>
    %c0_9 = arith.constant 0 : index
    %c0_10 = arith.constant 0 : index
    %c0_11 = arith.constant 0 : index
    %32 = vector.load %arg3[%c0_9, %c0_10, %c0_11] : memref<1x8x128xf32, #tpu.memory_space<vmem>>, vector<1x8x128xf32>
    tpu.vector_store %arg3[%c0_9, %c0_10, %c0_11], %31 {strides = array<i32>} : memref<1x8x128xf32, #tpu.memory_space<vmem>>, vector<1x8x128xf32>,
    return
  }
  func.func @transform_0(%arg0: i32) -> (i32, i32) {
    %c0_i32 = arith.constant 0 : i32
    %c0_i32_0 = arith.constant 0 : i32
    return %c0_i32, %arg0 : i32, i32
  }
  func.func @transform_1(%arg0: i32) -> (i32, i32) {
    %c0_i32 = arith.constant 0 : i32
    %c0_i32_0 = arith.constant 0 : i32
    return %c0_i32, %arg0 : i32, i32
  }
  func.func @transform_2(%arg0: i32) -> (i32, i32, i32) {
    %c0_i32 = arith.constant 0 : i32
    %c0_i32_0 = arith.constant 0 : i32
    %c0_i32_1 = arith.constant 0 : i32
    return %arg0, %c0_i32, %c0_i32_0 : i32, i32, i32
  }
}

</mosaic_0001>

<bundles_post_ra>
// kernel: tpu_custom_call.1
= control target key start
LH: loop header
LB: loop body
LE: loop exit
PB: predicated region body
PF: predicated region fallthrough
CT: control target
= control target key end

     0   :  { %vm15_vm0 = vcmask 64512   ;;  %vm17_vm1 = vcmask 58368   ;;  %s165_s0 = inlined_call_operand.vmem [shape: f32[10,8], index: 0, kind: input, shape index: {}]   ;;  %s166_s1 = inlined_call_operand.vmem [shape: s32[1,8], index: 1, kind: input, shape index: {}]   ;;  %s167_s2 = inlined_call_operand.hbm [shape: f32[1,8,128], index: 2, kind: output, shape index: {}]  }
   0x1   :  { %v12_v0 = vld [vmem:[%s165_s0] sm:$0xff]  ;;  %v13_v1 = vld [vmem:[%s165_s0 + $0x8] sm:$0x3] }
   0x2   :  { %v16_v2 = vsel %vm15_vm0, %v12_v0, -inf }
   0x3   :  { %7 = vsyncpa [#allocation3], 0  ;;  %v18_v3 = vsel %vm17_vm1, %v13_v1, -inf  ;;  %v44_v15 = vlaneseq  ;;  %v99_v18 = vld [vmem:[%s166_s1] ss:$0 sm:$0xff]  ;;  %vm72_vm5 = vcmask 57344  }
   0x4   :  { %v19_v4 = vmax.f32 %v16_v2, %v18_v3  ;;  %s131_s1 = smov [#allocation2]  }
   0x5   :  { %v45_v16 = vshrl.u32 %v44_v15, 7  ;;  %v66_v41 = vand.u32 127, %v44_v15  ;;  %s91_s14 = sshll.u32 %s131_s1, 4  ;;  %s92_s14 = int_to_ptr.vmem [resolvable:$true] %s91_s14 }
   0x6   :  { %v20_v5 = vrot.slane %v19_v4, 4  ;;  %s109_s16 = scalar_lea.vmem %s92_s14, 128  ;;  %p114_p1 = scmp.lt.s32.totalorder %s92_s14, %s92_s14 }
   0x7   :  { %v46_v17 = vadd.s32 8, %v45_v16  ;;  %vm51_vm2 = vcmp.eq.s32.totalorder %v45_v16, %v99_v18  ;;  %vm69_vm4 = vcmp.lt.s32.totalorder %v66_v41, 8  ;;  %p110_p0 = scmp.ne.s32.totalorder %s92_s14, %s109_s16  ;;  %p115_p2 = scmp.lt.s32.totalorder %s109_s16, %s109_s16 }
   0x8   :  { %v21_v6 = vmax.f32 %v19_v4, %v20_v5  ;;  %v53_v22 = vsel %vm51_vm2, %v12_v0, 0.0 }
   0x9   :  { %vm52_vm3 = vcmp.eq.s32.totalorder %v46_v17, %v99_v18  ;;  %v55_v26 = vsel %vm15_vm0, %v53_v22, 0.0  ;;  %p116_p3 = por %p115_p2, %p114_p1 }
   0xa   :  { %v22_v7 = vrot.slane %v21_v6, 2  ;;  %v54_v23 = vsel %vm52_vm3, %v13_v1, 0.0 }
   0xb   :  { %v56_v27 = vsel %vm17_vm1, %v54_v23, 0.0  ;;  %p117_p4 = pnand %p116_p3, %p110_p0 }
   0xc   :  { %v23_v8 = vmax.f32 %v21_v6, %v22_v7  ;;  %v57_v30 = vadd.f32 %v56_v27, %v55_v26 }
   0xe   :  { %v24_v9 = vrot.slane %v23_v8, 1  ;;  %v58_v33 = vrot.slane %v57_v30, 4 }
  0x10   :  { %v25_v10 = vmax.f32 %v23_v8, %v24_v9  ;;  %v59_v36 = vadd.f32 %v58_v33, %v57_v30 }
  0x12   :  { %v26_v11 = vsub.f32 %v12_v0, %v25_v10  ;;  %v27_v12 = vsub.f32 %v13_v1, %v25_v10  ;;  %v60_v37 = vrot.slane %v59_v36, 2 }
  0x14   :  { %v28_v13 = vmul.f32 1.442695, %v26_v11  ;;  %v30_v14 = vmul.f32 1.442695, %v27_v12  ;;  %v61_v38 = vadd.f32 %v60_v37, %v59_v36 }
  0x16   :  { %103 = vpow2.f32 %v28_v13  ;;  %v62_v39 = vrot.slane %v61_v38, 1 }
  0x17   :  { %105 = vpow2.f32 %v30_v14 }
  0x18   :  { %v63_v43 = vadd.f32 %v62_v39, %v61_v38 }
  0x23   :  { %v104_v19 = vpop.eup %103 }
  0x24   :  { %v106_v20 = vpop.eup %105  ;;  %v32_v21 = vsel %vm15_vm0, %v104_v19, 0.0 }
  0x25   :  { %v33_v24 = vsel %vm17_vm1, %v106_v20, 0.0 }
  0x26   :  { %v34_v25 = vadd.f32 %v33_v24, %v32_v21 }
  0x28   :  { %v35_v28 = vrot.slane %v34_v25, 4 }
  0x2a   :  { %v36_v29 = vadd.f32 %v35_v28, %v34_v25 }
  0x2c   :  { %v37_v31 = vrot.slane %v36_v29, 2 }
  0x2e   :  { %v38_v32 = vadd.f32 %v37_v31, %v36_v29 }
  0x30   :  { %v39_v34 = vrot.slane %v38_v32, 1 }
  0x32   :  { %v40_v35 = vadd.f32 %v39_v34, %v38_v32 }
  0x34   :  { %107 = vlog2.f32 %v40_v35 }
  0x41   :  { %v108_v40 = vpop.eup %107 }
  0x42   :  { %v42_v42 = vmul.f32 0.6931472, %v108_v40 }
  0x44   :  { %v43_v44 = vadd.f32 %v42_v42, %v25_v10 }
  0x46   :  { %v70_v45 = vsub.f32 %v43_v44, %v63_v43 }
  0x48   :  { %v71_v46 = vsel %vm69_vm4, %v70_v45, 0.0 }
  0x49   :  { %v73_v47 = vsel %vm72_vm5, %v71_v46, 0.0 }
  0x4a   :  { %74 = vadd.xlane.f32.xlu0 %v73_v47 }
  0xd3   :  { %v75_v48 = vpop.xlane.xlu0 %74 }
  0xd4   :  { %v76_v49 = vrot.slane %v75_v48, 4 }
  0xd6   :  { %v77_v50 = vadd.f32 %v76_v49, %v75_v48 }
  0xd8   :  { %v78_v51 = vrot.slane %v77_v50, 2 }
  0xda   :  { %v79_v52 = vadd.f32 %v78_v51, %v77_v50 }
  0xdc   :  { %v80_v53 = vrot.slane %v79_v52, 1 }
  0xde   :  { %v81_v54 = vadd.f32 %v80_v53, %v79_v52 }
  0xe0   :  { %100 = vpush %v81_v54 }
 0x111   :  { %s101_s15 = spop %100 }
 0x112   :  { %v83_v55 = vstv %s101_s15 }
 0x113   :  { %84 = vst [vmem:[#allocation2] sm:$0xff] %v83_v55 }
 0x114   :  { %120 = shalt.err (!%p117_p4)
}
 0x115   :  { %94 = dma.vmem_to_hbm [thread:$0]  %s92_s14, 128, %s167_s2, [#allocation3]  }
 0x116   :  { %129 = dma.done.wait [#allocation3], 128  }
 0x117   :  { %130 = vsyncadd [#allocation3], 4294967168 }
 0x118   :  { %98 = vsyncpa [#allocation3], 1 }

</bundles_post_ra>
